<compile_context>
chip_gen: v7x
topology: tpu7x:2x2x1
jax: 0.10.0
libtpu: 0.0.40
codegen_flags: <defaults>
</compile_context>

<pallas_src>
import functools

import jax
import jax.numpy as jnp
from jax.experimental import pallas as pl
from jax.experimental.pallas import tpu as pltpu

LANE = 128
# ~2 MiB per block: close to HBM roofline on v5e/v6e/v7x, and
# 2(in)+2(out) double-buffers = 8 MiB fits every generation's scoped VMEM.
_TARGET_BLOCK_BYTES = 2 * 1024 * 1024


def _gelu_exact(x):
    # 0.5 * x * (1 + erf(x / sqrt(2))) — torch.nn.GELU() default.
    return 0.5 * x * (1.0 + jax.lax.erf(x * jnp.float32(0.7071067811865476)))


def _residual_kernel(x_ref, o_ref, *, fn):
    x = x_ref[...]
    xf = x.astype(jnp.float32)
    y = fn(xf) + xf            # Residual: fn(x) + x
    o_ref[...] = y.astype(o_ref.dtype)


def _sublane_for(dtype):
    # Minimum sublane tile: 8 for 32-bit, 16 for 16-bit, 32 for 8-bit dtypes.
    itemsize = jnp.dtype(dtype).itemsize
    return max(8, 32 // itemsize)


def residual_pallas(x, fn=_gelu_exact):
    """out = fn(x) + x with fn an elementwise JAX function, via Pallas."""
    orig_shape = x.shape
    dtype = x.dtype
    n = x.size

    sublane = _sublane_for(dtype)
    itemsize = jnp.dtype(dtype).itemsize
    tile_elems = sublane * LANE

    x_flat = jnp.reshape(x, (-1,))

    # Rows processed by the Pallas kernel: a whole number of (sublane, 128)
    # tiles.  The remainder (< sublane*128 elements) is done in plain JAX.
    main_rows = (n // tile_elems) * sublane
    main_n = main_rows * LANE

    if main_rows == 0:
        # Too small to be worth a kernel launch.
        xf = x_flat.astype(jnp.float32)
        return jnp.reshape((fn(xf) + xf).astype(dtype), orig_shape)

    x_main = jnp.reshape(x_flat[:main_n], (main_rows, LANE))

    # dtype-aware block size: ~_TARGET_BLOCK_BYTES, a multiple of the sublane
    # tile, never larger than the slab itself (tiny inputs -> grid=(1,)).
    target_rows = max(sublane, _TARGET_BLOCK_BYTES // (LANE * itemsize))
    target_rows = (target_rows // sublane) * sublane
    row_tile = min(target_rows, main_rows)

    grid = (pl.cdiv(main_rows, row_tile),)

    kernel = functools.partial(_residual_kernel, fn=fn)
    out_main = pl.pallas_call(
        kernel,
        out_shape=jax.ShapeDtypeStruct((main_rows, LANE), dtype),
        grid_spec=pltpu.PrefetchScalarGridSpec(
            num_scalar_prefetch=0,
            grid=grid,
            in_specs=[pl.BlockSpec((row_tile, LANE), lambda i: (i, 0))],
            out_specs=pl.BlockSpec((row_tile, LANE), lambda i: (i, 0)),
        ),
        compiler_params=pltpu.CompilerParams(
            # Single streaming axis; 'parallel' lets v7x shard it across both
            # TensorCores.
            dimension_semantics=("parallel",),
        ),
    )(x_main)

    y_flat = jnp.reshape(out_main, (-1,))
    if main_n < n:
        # Tiny tail (< sublane*128 elems): plain JAX, no full-tensor copy.
        tail = x_flat[main_n:].astype(jnp.float32)
        y_tail = (fn(tail) + tail).astype(dtype)
        y_flat = jnp.concatenate([y_flat, y_tail])
    return jnp.reshape(y_flat, orig_shape)


if __name__ == "__main__":
    key = jax.random.PRNGKey(0)
    # NCHW input, same convention as the PyTorch module would receive.
    x = jax.random.normal(key, (2, 4, 16, 16), dtype=jnp.float32)

    y = residual_pallas(x)
    y = jax.block_until_ready(y)

    # Reference: Residual(GELU) forward.
    y_ref = jax.nn.gelu(x, approximate=False) + x
    assert y.shape == x.shape and y.dtype == x.dtype
    assert jnp.allclose(y, y_ref, atol=1e-5, rtol=1e-5)

    # Exercise the tiled path plus the plain-JAX tail (flat size not a
    # multiple of sublane*128).
    x2 = jax.random.normal(jax.random.PRNGKey(1), (3, 5, 17, 19), dtype=jnp.float32)
    y2 = jax.block_until_ready(residual_pallas(x2))
    y2_ref = jax.nn.gelu(x2, approximate=False) + x2
    assert y2.shape == x2.shape and y2.dtype == x2.dtype
    assert jnp.allclose(y2, y2_ref, atol=1e-5, rtol=1e-5)

    # TODO(synk): non-elementwise wrapped fns (e.g. attention/conv) need their
    # own fused kernel; this covers the elementwise-fn Residual case.
    print("KERNEL_OK")
</pallas_src>

<mosaic_0001>
module attributes {stable_mosaic.version = 11 : i64} {
  func.func @_residual_kernel(%arg0: i32, %arg1: memref<16x128xf32, #tpu.memory_space<vmem>>, %arg2: memref<16x128xf32, #tpu.memory_space<vmem>>) attributes {dimension_semantics = [#tpu.dimension_semantics<parallel>], iteration_bounds = array<i64: 1>, scalar_prefetch = 0 : i64, scratch_operands = 0 : i64, tpu.core_type = #tpu.core_type<tc>, window_params = [{transform_indices = @transform_0, window_bounds = array<i64: 16, 128>}, {transform_indices = @transform_1, window_bounds = array<i64: 16, 128>}]} {
    %c0 = arith.constant 0 : index
    %c0_0 = arith.constant 0 : index
    %0 = vector.load %arg1[%c0, %c0_0] : memref<16x128xf32, #tpu.memory_space<vmem>>, vector<16x128xf32>
    %cst = arith.constant 5.000000e-01 : f32
    %1 = vector.broadcast %cst : f32 to vector<16x128xf32>
    %2 = arith.mulf %1, %0 : vector<16x128xf32>
    %cst_1 = arith.constant 0.707106769 : f32
    %3 = vector.broadcast %cst_1 : f32 to vector<16x128xf32>
    %4 = arith.mulf %0, %3 : vector<16x128xf32>
    %5 = math.erf %4 : vector<16x128xf32>
    %cst_2 = arith.constant 1.000000e+00 : f32
    %6 = vector.broadcast %cst_2 : f32 to vector<16x128xf32>
    %7 = arith.addf %6, %5 : vector<16x128xf32>
    %8 = arith.mulf %2, %7 : vector<16x128xf32>
    %9 = arith.addf %8, %0 : vector<16x128xf32>
    %c0_3 = arith.constant 0 : index
    %c0_4 = arith.constant 0 : index
    %10 = vector.load %arg2[%c0_3, %c0_4] : memref<16x128xf32, #tpu.memory_space<vmem>>, vector<16x128xf32>
    tpu.vector_store %arg2[%c0_3, %c0_4], %9 {strides = array<i32>} : memref<16x128xf32, #tpu.memory_space<vmem>>, vector<16x128xf32>,
    return
  }
  func.func @transform_0(%arg0: i32) -> (i32, i32) {
    %c0_i32 = arith.constant 0 : i32
    %c0_i32_0 = arith.constant 0 : i32
    return %arg0, %c0_i32 : i32, i32
  }
  func.func @transform_1(%arg0: i32) -> (i32, i32) {
    %c0_i32 = arith.constant 0 : i32
    %c0_i32_0 = arith.constant 0 : i32
    return %arg0, %c0_i32 : i32, i32
  }
}

</mosaic_0001>

<bundles_post_ra>
// kernel: tpu_custom_call.1
= control target key start
LH: loop header
LB: loop body
LE: loop exit
PB: predicated region body
PF: predicated region fallthrough
CT: control target
= control target key end

     0   :  { %6 = vsyncpa [#allocation3], 0  ;;  %s156_s0 = inlined_call_operand.hbm [shape: f32[16,128], index: 0, kind: input, shape index: {}]   ;;  %s157_s1 = inlined_call_operand.hbm [shape: f32[16,128], index: 1, kind: output, shape index: {}]  }
   0x1   :  { %7 = vsyncpa [#allocation4], 0  ;;  %s112_s6 = smov [#allocation2]   ;;  %s64_s10 = scalar_lea.hbm %s156_s0, 256 }
   0x2   :  { %s13_s7 = sshll.u32 %s112_s6, 4  ;;  %p65_p0 = scmp.ne.s32.totalorder %s156_s0, %s64_s10  ;;  %s14_s7 = int_to_ptr.vmem [resolvable:$true] %s13_s7 }
   0x3   :  { %p68_p1 = scmp.lt.u32.totalorder %s64_s10, %s156_s0 }
   0x5   :  { %p70_p2 = pnand %p68_p1, %p65_p0 }
   0x7   :  { %73 = shalt.err (!%p70_p2)
}
   0x8   :  { %s74_s15 = scalar_lea.vmem %s14_s7, 256  ;;  %p79_p4 = scmp.lt.s32.totalorder %s14_s7, %s14_s7 }
   0x9   :  { %p75_p3 = scmp.ne.s32.totalorder %s14_s7, %s74_s15  ;;  %p80_p5 = scmp.lt.s32.totalorder %s74_s15, %s74_s15 }
   0xb   :  { %p81_p6 = por %p80_p5, %p79_p4 }
   0xd   :  { %p82_p7 = pnand %p81_p6, %p75_p3 }
   0xf   :  { %85 = shalt.err (!%p82_p7)
}
  0x10   :  { %s113_s16 = smov 128   ;;  %s114_s17 = smov 8  }
  0x11   :  { %19 = dma.hbm_to_vmem [thread:$0]  %s156_s0, 256, %s14_s7, [#allocation3], %s113_s16, %s113_s16, %s114_s17  }
  0x12   :  { %108 = dma.done.wait [#allocation3], 256  }
  0x13   :  { %109 = vsyncadd [#allocation3], 4294967040  ;;  %v23_v0 = vld [vmem:[#allocation2] sm:$0xff]  ;;  %v24_v1 = vld [vmem:[#allocation2 + $0x8] sm:$0xff]  ;;  %s115_s20 = smov [#allocation5]  }
  0x14   :  { %v27_v2 = vmul.f32 0.70710677, %v23_v0  ;;  %v28_v3 = vmul.f32 0.70710677, %v24_v1  ;;  %v25_v4 = vmul.f32 0.5, %v23_v0  ;;  %v26_v6 = vmul.f32 0.5, %v24_v1 }
  0x15   :  { %s44_s21 = sshll.u32 %s115_s20, 4  ;;  %s45_s21 = int_to_ptr.vmem [resolvable:$true] %s44_s21 }
  0x16   :  { %60 = verf.f32 %v27_v2  ;;  %s86_s0 = scalar_lea.vmem %s45_s21, 256  ;;  %p91_p9 = scmp.lt.s32.totalorder %s45_s21, %s45_s21 }
  0x17   :  { %62 = verf.f32 %v28_v3  ;;  %p87_p8 = scmp.ne.s32.totalorder %s45_s21, %s86_s0  ;;  %p92_p10 = scmp.lt.s32.totalorder %s86_s0, %s86_s0 }
  0x19   :  { %p93_p11 = por %p92_p10, %p91_p9 }
  0x1b   :  { %p94_p12 = pnand %p93_p11, %p87_p8 }
  0x20   :  { %v61_v5 = vpop.eup %60 }
  0x21   :  { %v63_v7 = vpop.eup %62  ;;  %v31_v8 = vadd.f32 1.0, %v61_v5 }
  0x22   :  { %v32_v9 = vadd.f32 1.0, %v63_v7 }
  0x23   :  { %v33_v10 = vmul.f32 %v31_v8, %v25_v4 }
  0x24   :  { %v34_v11 = vmul.f32 %v32_v9, %v26_v6 }
  0x25   :  { %v35_v12 = vadd.f32 %v33_v10, %v23_v0 }
  0x26   :  { %v36_v13 = vadd.f32 %v34_v11, %v24_v1 }
  0x27   :  { %37 = vst [vmem:[#allocation5] sm:$0xff] %v35_v12 }
  0x28   :  { %38 = vst [vmem:[#allocation5 + $0x8] sm:$0xff] %v36_v13 }
  0x29   :  { %97 = shalt.err (!%p94_p12)
}
  0x2a   :  { %s98_s24 = scalar_lea.hbm %s157_s1, 256 }
  0x2b   :  { %p99_p13 = scmp.ne.s32.totalorder %s157_s1, %s98_s24  ;;  %p102_p0 = scmp.lt.u32.totalorder %s98_s24, %s157_s1 }
  0x2d   :  { %p104_p1 = pnand %p102_p0, %p99_p13 }
  0x2f   :  { %107 = shalt.err (!%p104_p1)
}
  0x30   :  { %50 = dma.vmem_to_hbm [thread:$0]  %s45_s21, 256, %s157_s1, [#allocation4], %s113_s16, %s113_s16, %s114_s17  }
  0x31   :  { %110 = dma.done.wait [#allocation4], 256  }
  0x32   :  { %111 = vsyncadd [#allocation4], 4294967040 }
  0x33   :  { %54 = vsyncpa [#allocation3], 1 }
  0x34   :  { %55 = vsyncpa [#allocation4], 1 }

</bundles_post_ra>
